<compile_context>
chip_gen: v7x
topology: tpu7x:2x2x1
jax: 0.10.0
libtpu: 0.0.40
codegen_flags: <defaults>
</compile_context>

<pallas_src>
import functools
import numpy as np

import jax
import jax.numpy as jnp
from jax.experimental import pallas as pl
from jax.experimental.pallas import tpu as pltpu


def _round_up(x, m):
    return (x + m - 1) // m * m


def _vmem_capacity_bytes():
    """Per-core VMEM capacity; conservative 64 MiB (v7x) fallback."""
    try:
        info = pltpu.get_tpu_info()
        cap = getattr(info, "vmem_capacity_bytes", None)
        if cap:
            return int(cap)
    except Exception:
        pass
    return 64 * 1024 * 1024


# transcendentals per output element (cost estimate only)
_TRANSC = {"mse": 0, "onehot": 0, "normal": 0,
           "binary": 1, "tanh_normal": 3, "trunc_normal": 2}

_NORMAL_FAMILY = ("normal", "tanh_normal", "trunc_normal")


def _sigmoid(z):
    # explicit form to avoid relying on a logistic lowering inside Mosaic
    return 1.0 / (1.0 + jnp.exp(-z))


def _softplus(z):
    # numerically-stable softplus with basic ops only
    return jnp.maximum(z, 0.0) + jnp.log(1.0 + jnp.exp(-jnp.abs(z)))


# ---------------------------------------------------------------------------
# Pallas kernel (unified: K-tiled accumulation + packed mean/std heads)
# ---------------------------------------------------------------------------
def _dist_layer_kernel(x_ref, w_ref, b_ref, out_ref, acc_ref, *,
                       dist, out_dim, init_std, min_std):
    k = pl.program_id(1)

    @pl.when(k == 0)
    def _():
        acc_ref[...] = jnp.zeros_like(acc_ref)

    x = x_ref[...]
    w = w_ref[...]
    if x.dtype != w.dtype:
        x = x.astype(w.dtype)          # on-chip cast -> native bf16 MXU path
    acc_ref[...] += jnp.dot(x, w, preferred_element_type=jnp.float32)

    @pl.when(k == pl.num_programs(1) - 1)
    def _():
        y = acc_ref[...] + b_ref[...].astype(jnp.float32)   # bias kept in f32
        if dist in ("mse", "onehot", "normal"):
            res = y
        elif dist == "binary":
            res = _sigmoid(y)
        elif dist in ("tanh_normal", "trunc_normal"):
            # mean head lives in cols [0:out_dim], std head in [out_dim:2*out_dim]
            col = jax.lax.broadcasted_iota(jnp.int32, y.shape, 1)
            is_mean = col < out_dim
            if dist == "tanh_normal":
                mean_t = 5.0 * jnp.tanh(y * 0.2)
                std_t = _softplus(y + init_std) + min_std
            else:  # trunc_normal
                mean_t = jnp.tanh(y)
                std_t = 2.0 * _sigmoid((y + init_std) * 0.5) + min_std
            res = jnp.where(is_mean, mean_t, std_t)
        else:
            raise NotImplementedError(dist)
        out_ref[...] = res.astype(out_ref.dtype)


# ---------------------------------------------------------------------------
# jit-able forward (pad -> pallas_call -> slice -> reshape)
# ---------------------------------------------------------------------------
def _dist_layer_forward(inputs, w_fused, b_fused, *, in_dim, k_pad, tk, d_cols,
                        out_dim, shape, dist, init_std, min_std, out_dtype,
                        vmem_cap, n_transc):
    lead = inputs.shape[:-1]
    x = inputs.reshape(-1, in_dim)
    B = x.shape[0]
    if k_pad != in_dim:
        x = jnp.pad(x, ((0, 0), (0, k_pad - in_dim)))

    x_bytes = x.dtype.itemsize
    w_bytes = w_fused.dtype.itemsize
    o_bytes = np.dtype(out_dtype).itemsize

    # Batch tile: biggest that fits ~60% of this generation's VMEM, kept a
    # multiple of the sublane packing for the input dtype.
    base = 8 if x_bytes >= 4 else (16 if x_bytes == 2 else 32)
    budget = int(vmem_cap * 0.6)
    tm = min(2048, _round_up(max(B, 1), base))

    def footprint(t):
        return (2 * t * tk * x_bytes            # x tiles, double-buffered
                + 2 * tk * d_cols * w_bytes     # weight tiles (2 bufs; constant
                                                #  when nk==1 -- Buffered(1) would
                                                #  save this, left default for
                                                #  portability)
                + 2 * 8 * d_cols * 4            # bias (sublane-padded), f32
                + 2 * t * d_cols * o_bytes      # output tiles
                + t * d_cols * 4)               # f32 accumulator scratch

    while tm > base and footprint(tm) > budget:
        tm = max(base, (tm // 2) // base * base)

    b_pad = _round_up(max(B, 1), tm)
    if b_pad != B:
        x = jnp.pad(x, ((0, b_pad - B), (0, 0)))

    nk = k_pad // tk
    grid = (b_pad // tm, nk)

    fp = footprint(tm)
    vmem_limit = int(min(max(int(fp * 1.4) + (4 << 20), 32 << 20),
                         vmem_cap - (2 << 20)))

    kernel = functools.partial(_dist_layer_kernel, dist=dist, out_dim=out_dim,
                               init_std=init_std, min_std=min_std)
    cost = pl.CostEstimate(
        flops=2 * b_pad * k_pad * d_cols,
        transcendentals=b_pad * d_cols * n_transc,
        bytes_accessed=(b_pad * k_pad * x_bytes + k_pad * d_cols * w_bytes
                        + d_cols * 4 + b_pad * d_cols * o_bytes))

    out = pl.pallas_call(
        kernel,
        grid=grid,
        in_specs=[
            pl.BlockSpec((tm, tk), lambda i, k: (i, k)),       # x
            pl.BlockSpec((tk, d_cols), lambda i, k: (k, 0)),   # fused weight
            pl.BlockSpec((1, d_cols), lambda i, k: (0, 0)),    # bias (f32)
        ],
        out_specs=pl.BlockSpec((tm, d_cols), lambda i, k: (i, 0)),
        out_shape=jax.ShapeDtypeStruct((b_pad, d_cols), out_dtype),
        scratch_shapes=[pltpu.VMEM((tm, d_cols), jnp.float32)],
        compiler_params=pltpu.CompilerParams(
            dimension_semantics=("parallel", "arbitrary"),
            vmem_limit_bytes=vmem_limit),
        cost_estimate=cost,
    )(x, w_fused, b_fused)

    out = out[:B]
    mean = out[:, :out_dim].reshape(lead + shape)
    if dist in _NORMAL_FAMILY:
        std = out[:, out_dim:2 * out_dim].reshape(lead + shape)
        return mean, std
    return mean


# ---------------------------------------------------------------------------
# DistLayer wrapper
# ---------------------------------------------------------------------------
class DistLayerPallas:
    """JAX/Pallas re-implementation of DistLayer's forward pass.

    Returns the distribution parameters (instead of a torch Distribution obj):
      - 'mse'          -> mean                      (std is the constant 1.0)
      - 'normal'       -> (mean, std)
      - 'binary'       -> sigmoid(out)  (the tensor handed to BernoulliDist)
      - 'tanh_normal'  -> (mean, std)   of the SquashedNormal base
      - 'trunc_normal' -> (mean, std)   of the TruncatedNormal
      - 'onehot'       -> logits
    """

    def __init__(self, in_dim, shape, dist="mse", min_std=0.1, init_std=0.0,
                 bias=True, weight_dtype=jnp.bfloat16, out_dtype=jnp.float32,
                 k_tile=None, key=None):
        if key is None:
            key = jax.random.PRNGKey(0)
        self._in_dim = int(in_dim)
        self._shape = tuple(shape) if isinstance(shape, (list, tuple)) else (int(shape),)
        self._dist = dist
        self._min_std = float(min_std)
        self._init_std = float(init_std)
        self._weight_dtype = weight_dtype   # bf16 halves weight HBM reads; matmul
        self._out_dtype = out_dtype         # still accumulates f32 (v5e-safe).
        self._has_std = dist in _NORMAL_FAMILY

        out_dim = int(np.prod(self._shape))
        self._out_dim = out_dim
        n_heads = 2 if self._has_std else 1
        # Packed head layout: mean cols [0:out_dim], std cols [out_dim:2*out_dim],
        # total padded to a multiple of 128 lanes (unmasked vst stores).
        d_cols = _round_up(n_heads * out_dim, 128)
        self._d_cols = d_cols

        self._vmem_cap = _vmem_capacity_bytes()
        w_bytes = np.dtype(weight_dtype).itemsize

        # K (in_dim) tiling decision -- keeps the resident weight block small on
        # 64 MiB v7x parts; tk == in_dim means "no K tiling" (single K step).
        if k_tile is not None:
            tk = int(k_tile)
            if tk != self._in_dim and tk % 128 != 0:
                raise ValueError("k_tile must equal in_dim or be a multiple of 128")
            tk = min(tk, _round_up(self._in_dim, 128))
        else:
            tk = self._in_dim
            w_budget = self._vmem_cap // 4
            while tk > 128 and 2 * tk * d_cols * w_bytes > w_budget:
                tk = max(128, _round_up(tk // 2, 128))
        k_pad = _round_up(self._in_dim, tk) if tk < self._in_dim else self._in_dim
        k_pad = max(k_pad, tk)
        self._tk, self._k_pad = tk, k_pad

        # --- parameters (nn.Linear default init), packed & padded ------------
        k1, k2, k3, k4 = jax.random.split(key, 4)
        bound = 1.0 / np.sqrt(self._in_dim)
        w_out = jax.random.uniform(k1, (self._in_dim, out_dim), jnp.float32, -bound, bound)
        b_out = (jax.random.uniform(k2, (1, out_dim), jnp.float32, -bound, bound)
                 if bias else jnp.zeros((1, out_dim), jnp.float32))
        w = jnp.zeros((k_pad, d_cols), jnp.float32).at[:self._in_dim, :out_dim].set(w_out)
        b = jnp.zeros((1, d_cols), jnp.float32).at[:, :out_dim].set(b_out)
        if self._has_std:
            # torch's self._std = nn.Linear(...) always has a bias.
            w_std = jax.random.uniform(k3, (self._in_dim, out_dim), jnp.float32, -bound, bound)
            b_std = jax.random.uniform(k4, (1, out_dim), jnp.float32, -bound, bound)
            w = w.at[:self._in_dim, out_dim:2 * out_dim].set(w_std)
            b = b.at[:, out_dim:2 * out_dim].set(b_std)
        self._w_fused = w.astype(weight_dtype)   # bf16 storage (free at init)
        self._b_fused = b                        # bias stays f32

        # jit the full forward (pad/slice/reshape fuse; dispatch amortized).
        self._forward = jax.jit(functools.partial(
            _dist_layer_forward,
            in_dim=self._in_dim, k_pad=self._k_pad, tk=self._tk,
            d_cols=self._d_cols, out_dim=self._out_dim, shape=self._shape,
            dist=self._dist, init_std=self._init_std, min_std=self._min_std,
            out_dtype=self._out_dtype, vmem_cap=self._vmem_cap,
            n_transc=_TRANSC[self._dist]))

    def __call__(self, inputs):
        return self._forward(inputs, self._w_fused, self._b_fused)


# ---------------------------------------------------------------------------
# Pure-JAX reference (same packed bf16 parameters -> exact comparison)
# ---------------------------------------------------------------------------
def _reference(layer, inputs):
    lead = inputs.shape[:-1]
    x = inputs.reshape(-1, layer._in_dim)
    w = layer._w_fused[:layer._in_dim]
    cd = w.dtype
    y = jnp.dot(x.astype(cd), w, preferred_element_type=jnp.float32)
    y = y + layer._b_fused.astype(jnp.float32)
    od, shp, d = layer._out_dim, layer._shape, layer._dist
    out = y[:, :od]
    if d in ("mse", "onehot"):
        return out.reshape(lead + shp)
    if d == "binary":
        return jax.nn.sigmoid(out).reshape(lead + shp)
    std = y[:, od:2 * od]
    if d == "normal":
        mean, s = out, std
    elif d == "tanh_normal":
        mean = 5.0 * jnp.tanh(out / 5.0)
        s = jax.nn.softplus(std + layer._init_std) + layer._min_std
    elif d == "trunc_normal":
        mean = jnp.tanh(out)
        s = 2.0 * jax.nn.sigmoid((std + layer._init_std) / 2.0) + layer._min_std
    else:
        raise NotImplementedError(d)
    return mean.reshape(lead + shp), s.reshape(lead + shp)


if __name__ == "__main__":
    key = jax.random.PRNGKey(0)
    k_in, k_layer, k_in2, k_layer2 = jax.random.split(key, 4)

    batch, n_agents, in_dim = 2, 4, 32
    shape = (8,)                       # e.g. 8 actions / output features
    inputs = jax.random.normal(k_in, (batch, n_agents, in_dim), jnp.float32)

    ok = True
    for dist in ("mse", "binary", "onehot", "normal", "tanh_normal", "trunc_normal"):
        layer = DistLayerPallas(in_dim, shape, dist=dist, min_std=0.1,
                                init_std=0.0, bias=True, key=k_layer)
        result = jax.block_until_ready(layer(inputs))
        ref = _reference(layer, inputs)
        res_flat = result if isinstance(result, tuple) else (result,)
        ref_flat = ref if isinstance(ref, tuple) else (ref,)
        for r, g in zip(res_flat, ref_flat):
            ok = ok and (r.shape == g.shape)
            ok = ok and bool(jnp.allclose(r, g, atol=1e-3, rtol=1e-3))

    # Exercise the K-tiled (reduction grid + VMEM accumulator) path.
    big_in = 512
    inputs2 = jax.random.normal(k_in2, (batch, n_agents, big_in), jnp.float32)
    layer2 = DistLayerPallas(big_in, shape, dist="tanh_normal", min_std=0.1,
                             init_std=0.0, bias=True, k_tile=256, key=k_layer2)
    result2 = jax.block_until_ready(layer2(inputs2))
    ref2 = _reference(layer2, inputs2)
    for r, g in zip(result2, ref2):
        ok = ok and (r.shape == g.shape)
        ok = ok and bool(jnp.allclose(r, g, atol=1e-3, rtol=1e-3))

    # TODO(synk): downstream Distribution objects (sampling, log_prob, SampleDist
    # Monte-Carlo mode/entropy) are stateful torch.distributions machinery, not
    # part of the forward hot path; the kernel returns their parameters.
    print("KERNEL_OK" if ok else "MISMATCH")
</pallas_src>

<mosaic_0001>
module attributes {stable_mosaic.version = 11 : i64} {
  func.func @_dist_layer_kernel(%arg0: i32, %arg1: i32, %arg2: memref<8x32xf32, #tpu.memory_space<vmem>>, %arg3: memref<32x128xbf16, #tpu.memory_space<vmem>>, %arg4: memref<1x128xf32, #tpu.memory_space<vmem>>, %arg5: memref<8x128xf32, #tpu.memory_space<vmem>>, %arg6: memref<8x128xf32, #tpu.memory_space<vmem>>) attributes {dimension_semantics = [#tpu.dimension_semantics<parallel>, #tpu.dimension_semantics<arbitrary>], iteration_bounds = array<i64: 1, 1>, scalar_prefetch = 0 : i64, scratch_operands = 1 : i64, tpu.core_type = #tpu.core_type<tc>, window_params = [{transform_indices = @transform_0, window_bounds = array<i64: 8, 32>}, {transform_indices = @transform_1, window_bounds = array<i64: 32, 128>}, {pipeline_mode = #tpu.pipeline_mode<synchronous>, transform_indices = @transform_2, window_bounds = array<i64: 1, 128>}, {transform_indices = @transform_3, window_bounds = array<i64: 8, 128>}]} {
    %c0_i32 = arith.constant 0 : i32
    %0 = arith.cmpi eq, %arg1, %c0_i32 : i32
    %1 = arith.extui %0 : i1 to i32
    %c0_i32_0 = arith.constant 0 : i32
    %2 = arith.cmpi ne, %1, %c0_i32_0 : i32
    scf.if %2 {
      %cst_10 = arith.constant 0.000000e+00 : f32
      %13 = vector.broadcast %cst_10 : f32 to vector<8x128xf32>
      %c0_11 = arith.constant 0 : index
      %c0_12 = arith.constant 0 : index
      %14 = vector.load %arg6[%c0_11, %c0_12] : memref<8x128xf32, #tpu.memory_space<vmem>>, vector<8x128xf32>
      tpu.vector_store %arg6[%c0_11, %c0_12], %13 {strides = array<i32>} : memref<8x128xf32, #tpu.memory_space<vmem>>, vector<8x128xf32>,
    } else {
    }
    %c0 = arith.constant 0 : index
    %c0_1 = arith.constant 0 : index
    %3 = vector.load %arg2[%c0, %c0_1] : memref<8x32xf32, #tpu.memory_space<vmem>>, vector<8x32xf32>
    %c0_2 = arith.constant 0 : index
    %c0_3 = arith.constant 0 : index
    %4 = vector.load %arg3[%c0_2, %c0_3] : memref<32x128xbf16, #tpu.memory_space<vmem>>, vector<32x128xbf16>
    %5 = arith.truncf %3 : vector<8x32xf32> to vector<8x32xbf16>
    %c0_4 = arith.constant 0 : index
    %c0_5 = arith.constant 0 : index
    %6 = vector.load %arg6[%c0_4, %c0_5] : memref<8x128xf32, #tpu.memory_space<vmem>>, vector<8x128xf32>
    %cst = arith.constant dense<0.000000e+00> : vector<8x128xf32>
    %7 = tpu.matmul %5, %4, %cst {dimension_numbers = #tpu.dot_dimension_numbers<[1], [0], [0], [1], [0, 0, 1, 1], [], []>} : vector<8x32xbf16>, vector<32x128xbf16>, vector<8x128xf32> -> vector<8x128xf32>
    %8 = arith.addf %6, %7 : vector<8x128xf32>
    %c0_6 = arith.constant 0 : index
    %c0_7 = arith.constant 0 : index
    %9 = vector.load %arg6[%c0_6, %c0_7] : memref<8x128xf32, #tpu.memory_space<vmem>>, vector<8x128xf32>
    tpu.vector_store %arg6[%c0_6, %c0_7], %8 {strides = array<i32>} : memref<8x128xf32, #tpu.memory_space<vmem>>, vector<8x128xf32>,
    %c0_i32_8 = arith.constant 0 : i32
    %10 = arith.cmpi eq, %arg1, %c0_i32_8 : i32
    %11 = arith.extui %10 : i1 to i32
    %c0_i32_9 = arith.constant 0 : i32
    %12 = arith.cmpi ne, %11, %c0_i32_9 : i32
    scf.if %12 {
      %c0_10 = arith.constant 0 : index
      %c0_11 = arith.constant 0 : index
      %13 = vector.load %arg6[%c0_10, %c0_11] : memref<8x128xf32, #tpu.memory_space<vmem>>, vector<8x128xf32>
      %c0_12 = arith.constant 0 : index
      %c0_13 = arith.constant 0 : index
      %14 = vector.load %arg4[%c0_12, %c0_13] : memref<1x128xf32, #tpu.memory_space<vmem>>, vector<1x128xf32>
      %15 = vector.broadcast %14 : vector<1x128xf32> to vector<8x128xf32>
      %16 = arith.addf %13, %15 : vector<8x128xf32>
      %c0_14 = arith.constant 0 : index
      %c0_15 = arith.constant 0 : index
      %17 = vector.load %arg5[%c0_14, %c0_15] : memref<8x128xf32, #tpu.memory_space<vmem>>, vector<8x128xf32>
      tpu.vector_store %arg5[%c0_14, %c0_15], %16 {strides = array<i32>} : memref<8x128xf32, #tpu.memory_space<vmem>>, vector<8x128xf32>,
    } else {
    }
    return
  }
  func.func @transform_0(%arg0: i32, %arg1: i32) -> (i32, i32) {
    %c0_i32 = arith.constant 0 : i32
    return %arg0, %arg1 : i32, i32
  }
  func.func @transform_1(%arg0: i32, %arg1: i32) -> (i32, i32) {
    %c0_i32 = arith.constant 0 : i32
    %c0_i32_0 = arith.constant 0 : i32
    return %arg1, %c0_i32 : i32, i32
  }
  func.func @transform_2(%arg0: i32, %arg1: i32) -> (i32, i32) {
    %c0_i32 = arith.constant 0 : i32
    %c0_i32_0 = arith.constant 0 : i32
    %c0_i32_1 = arith.constant 0 : i32
    return %c0_i32, %c0_i32_0 : i32, i32
  }
  func.func @transform_3(%arg0: i32, %arg1: i32) -> (i32, i32) {
    %c0_i32 = arith.constant 0 : i32
    %c0_i32_0 = arith.constant 0 : i32
    return %arg0, %c0_i32 : i32, i32
  }
}

</mosaic_0001>

<bundles_post_ra>
// kernel: _dist_layer_forward.1
= control target key start
LH: loop header
LB: loop body
LE: loop exit
PB: predicated region body
PF: predicated region fallthrough
CT: control target
= control target key end

     0   :  { %8 = vsyncpa [#allocation4], 0  ;;  %s310_s0 = inlined_call_operand.hbm [shape: f32[8,32], index: 0, kind: input, shape index: {}]   ;;  %s311_s1 = inlined_call_operand.hbm [shape: bf16[32,128], index: 1, kind: input, shape index: {}]   ;;  %s312_s2 = inlined_call_operand.vmem [shape: f32[1,128], index: 2, kind: input, shape index: {}]   ;;  %s313_s3 = inlined_call_operand.hbm [shape: f32[8,128], index: 3, kind: output, shape index: {}]  }
   0x1   :  { %9 = vsyncpa [#allocation7], 0 }
   0x2   :  { %10 = vsyncpa [#allocation5], 0  ;;  %s237_s12 = smov [#allocation3]   ;;  %s238_s14 = smov [#allocation6]  }
   0x3   :  { %s17_s13 = sshll.u32 %s237_s12, 4  ;;  %s26_s15 = sshll.u32 %s238_s14, 4  ;;  %s18_s13 = int_to_ptr.vmem [resolvable:$true] %s17_s13  ;;  %s264_s15 = int_to_ptr.vmem [resolvable:$true] %s26_s15 }
   0x4   :  { %s165_s18 = scalar_lea.hbm %s310_s0, 128 }
   0x5   :  { %p166_p0 = scmp.ne.s32.totalorder %s310_s0, %s165_s18  ;;  %p169_p1 = scmp.lt.u32.totalorder %s165_s18, %s310_s0 }
   0x7   :  { %p171_p2 = pnand %p169_p1, %p166_p0 }
   0x9   :  { %174 = shalt.err (!%p171_p2)
}
   0xa   :  { %s175_s23 = scalar_lea.vmem %s18_s13, 128  ;;  %p180_p4 = scmp.lt.s32.totalorder %s18_s13, %s18_s13 }
   0xb   :  { %p176_p3 = scmp.ne.s32.totalorder %s18_s13, %s175_s23  ;;  %p181_p5 = scmp.lt.s32.totalorder %s175_s23, %s175_s23 }
   0xd   :  { %p182_p6 = por %p181_p5, %p180_p4 }
   0xf   :  { %p183_p7 = pnand %p182_p6, %p176_p3 }
  0x11   :  { %186 = shalt.err (!%p183_p7)
}
  0x12   :  { %20 = dma.hbm_to_vmem [thread:$0]  %s310_s0, 128, %s18_s13, [#allocation4]  }
  0x13   :  { %s187_s28 = scalar_lea.hbm %s311_s1, 256 }
  0x14   :  { %p188_p8 = scmp.ne.s32.totalorder %s311_s1, %s187_s28  ;;  %p191_p9 = scmp.lt.u32.totalorder %s187_s28, %s311_s1 }
  0x16   :  { %p193_p10 = pnand %p191_p9, %p188_p8 }
  0x18   :  { %196 = shalt.err (!%p193_p10)
}
  0x19   :  { %s197_s6 = scalar_lea.vmem %s264_s15, 256  ;;  %p202_p12 = scmp.lt.s32.totalorder %s264_s15, %s264_s15 }
  0x1a   :  { %p198_p11 = scmp.ne.s32.totalorder %s264_s15, %s197_s6  ;;  %p203_p13 = scmp.lt.s32.totalorder %s197_s6, %s197_s6 }
  0x1c   :  { %p204_p0 = por %p203_p13, %p202_p12 }
  0x1e   :  { %p205_p1 = pnand %p204_p0, %p198_p11 }
  0x20   :  { %208 = shalt.err (!%p205_p1)
}
  0x21   :  { %s239_s0 = smov 64   ;;  %s240_s7 = smov 4  }
  0x22   :  { %32 = dma.hbm_to_vmem [thread:$0]  %s311_s1, 256, %s264_s15, [#allocation7], %s239_s0, %s239_s0, %s240_s7  }
  0x23   :  { %231 = dma.done.wait [#allocation4], 128  }
  0x24   :  { %232 = vsyncadd [#allocation4], 4294967168 }
  0x25   :  { %233 = dma.done.wait [#allocation7], 256  }
  0x26   :  { %234 = vsyncadd [#allocation7], 4294967040  ;;  %v241_v0 = vmov 0.0   ;;  %vm242_vm0 = vmmov 0   ;;  %v163_v1 = vld [vmem:[#allocation6] sm:$0xff]   ;;  %v164_v2 = vld [vmem:[#allocation6 + $0x8] sm:$0xff]  }
  0x27   :  { %148 = vmatprep.subr.bf16.mxu0 %v241_v0  ;;  %152 = vmatprep.mubr.msk.bf16.mxu0 %vm242_vm0, %v241_v0  ;;  %v47_v3 = vld [vmem:[#allocation3] sm:$0xff]  ;;  %vm66_vm1 = vcmask 261120   ;;  %s243_s1 = smov [#allocation8]  }
  0x28   :  { %149 = vmatpush3.bf16.msra.mxu0 %v163_v1  ;;  %v52_v4 = vpack.c.bf16 %v47_v3, %v47_v3  ;;  %v144_v5 = vld [vmem:[%s312_s2] ss:$0 sm:$0xff]  ;;  %s131_s12 = sshll.u32 %s243_s1, 4  ;;  %s132_s12 = int_to_ptr.vmem [resolvable:$true] %s131_s12 }
  0x29   :  { %150 = vmatprep.subr.bf16.mxu0 %v241_v0  ;;  %s209_s13 = scalar_lea.vmem %s132_s12, 128  ;;  %p214_p3 = scmp.lt.s32.totalorder %s132_s12, %s132_s12 }
  0x2a   :  { %p210_p2 = scmp.ne.s32.totalorder %s132_s12, %s209_s13  ;;  %p215_p4 = scmp.lt.s32.totalorder %s209_s13, %s209_s13 }
  0x2c   :  { %151 = vmatpush3.bf16.msra.mxu0 %v164_v2  ;;  %p216_p5 = por %p215_p4, %p214_p3 }
  0x2e   :  { %p217_p6 = pnand %p216_p5, %p210_p2 }
  0x2f   :  { %153 = vmatmul.mubr.msk.bf16.vlgmr.msra.gmra.mrb[0].mxu0 %vm66_vm1, %v52_v4 }
 0x102   :  { %v104_v6 = vpop.f32.mrb[0].mxu0 }
 0x103   :  { %v123_v7 = vadd.f32 %v144_v5, %v104_v6  ;;  %v154_v8 = vpop.f32.mrb[1].mxu0 }
 0x104   :  { %v107_v9 = vpop.f32.mrb[2].mxu0 }
 0x105   :  { %124 = vst [vmem:[#allocation8] sm:$0xff] %v123_v7  ;;  %v155_v10 = vpop.f32.mrb[3].mxu0 }
 0x106   :  { %220 = shalt.err (!%p217_p6)
}
 0x107   :  { %s221_s2 = scalar_lea.hbm %s313_s3, 128 }
 0x108   :  { %p222_p7 = scmp.ne.s32.totalorder %s313_s3, %s221_s2  ;;  %p225_p8 = scmp.lt.u32.totalorder %s221_s2, %s313_s3 }
 0x10a   :  { %p227_p9 = pnand %p225_p8, %p222_p7 }
 0x10c   :  { %230 = shalt.err (!%p227_p9)
}
 0x10d   :  { %134 = dma.vmem_to_hbm [thread:$0]  %s132_s12, 128, %s313_s3, [#allocation5]  }
 0x10e   :  { %235 = dma.done.wait [#allocation5], 128  }
 0x10f   :  { %236 = vsyncadd [#allocation5], 4294967168 }
 0x110   :  { %138 = vsyncpa [#allocation4], 1 }
 0x111   :  { %139 = vsyncpa [#allocation7], 1 }
 0x112   :  { %140 = vsyncpa [#allocation5], 1 }

</bundles_post_ra>
